<compile_context>
chip_gen: v7x
topology: tpu7x:2x2x1
jax: 0.10.0
libtpu: 0.0.40
codegen_flags: <defaults>
</compile_context>

<pallas_src>
import jax
import jax.numpy as jnp
from jax.experimental import pallas as pl
from jax.experimental.pallas import tpu as pltpu


def _round_up(x, m):
    return ((x + m - 1) // m) * m


def _patch_embed_kernel(p_ref, w_ref, b_ref, o_ref):
    # p_ref: (TM, K) bf16 flattened patches (double-buffered over the M grid)
    # w_ref: (K, E)  bf16 projection weight (grid-invariant, single buffer)
    # b_ref: (1, E)  f32 bias               (grid-invariant, single buffer)
    # o_ref: (TM, E) out_dtype (bf16 by default)
    acc = jnp.dot(p_ref[...], w_ref[...], preferred_element_type=jnp.float32)
    o_ref[...] = (acc + b_ref[...]).astype(o_ref.dtype)


def patch_embed(x, weight, bias, patch_size, *, tm=2048, out_dtype=jnp.bfloat16):
    """x: (N, C, H, W); weight: (E, C, p, p); bias: (E,).

    Returns (N, n_patches, E), matching
    nn.Conv2d(C, E, kernel_size=p, stride=p)(x).flatten(2).transpose(1, 2),
    computed with bf16 operands and f32 accumulation.
    """
    n, c, h, w = x.shape
    e = weight.shape[0]
    p = patch_size
    assert h % p == 0 and w % p == 0, "img_size must be divisible by patch_size"
    hp, wp = h // p, w // p
    n_patches = hp * wp
    k = c * p * p
    m = n * n_patches

    # ---- XLA-side patchify: one fused HBM pass (read x f32, write bf16). ----
    # (N, C, H, W) -> (N, C, hp, p, wp, p) -> (N, hp, wp, C, p, p) -> (M, K)
    patches = (x.reshape(n, c, hp, p, wp, p)
                 .transpose(0, 2, 4, 1, 3, 5)
                 .reshape(m, k)
                 .astype(jnp.bfloat16))
    w_mat = weight.astype(jnp.bfloat16).reshape(e, k).T        # (K, E) bf16
    b_mat = bias.astype(jnp.float32).reshape(1, e)             # (1, E) f32

    # ---- M tiling with an explicit VMEM budget (no padding of any axis). ----
    out_itemsize = jnp.dtype(out_dtype).itemsize
    if m <= tm:
        tm_eff = m                    # single block == full M extent (legal)
    else:
        tm_eff = _round_up(tm, 8)     # 8-sublane aligned; last tile is ragged

    # 2x buffers for patches + output tiles, 1x for resident weight/bias.
    fixed_vmem = k * e * 2 + e * 4
    def _tiles_vmem(tm_):
        return 2 * tm_ * k * 2 + 2 * tm_ * e * out_itemsize
    vmem_target = 24 * 1024 * 1024    # headroom under the 32 MiB scoped limit
    while (tm_eff > 8 and tm_eff % 8 == 0
           and _tiles_vmem(tm_eff) + fixed_vmem > vmem_target):
        tm_eff = max(8, (tm_eff // 2 // 8) * 8)

    grid = (pl.cdiv(m, tm_eff),)

    cost = pl.CostEstimate(
        flops=2 * m * k * e,
        transcendentals=0,
        bytes_accessed=(patches.size * patches.dtype.itemsize
                        + w_mat.size * w_mat.dtype.itemsize
                        + b_mat.size * b_mat.dtype.itemsize
                        + m * e * out_itemsize),
    )

    def _call(resident_kwargs):
        return pl.pallas_call(
            _patch_embed_kernel,
            out_shape=jax.ShapeDtypeStruct((m, e), out_dtype),
            grid_spec=pltpu.PrefetchScalarGridSpec(
                num_scalar_prefetch=0,
                grid=grid,
                in_specs=[
                    # Patches: tiled over M, double-buffered by the pipeline.
                    pl.BlockSpec((tm_eff, k), lambda i: (i, 0)),
                    # Weight / bias: grid-invariant, stay resident in VMEM.
                    pl.BlockSpec((k, e), lambda i: (0, 0), **resident_kwargs),
                    pl.BlockSpec((1, e), lambda i: (0, 0), **resident_kwargs),
                ],
                out_specs=pl.BlockSpec((tm_eff, e), lambda i: (i, 0)),
            ),
            compiler_params=pltpu.CompilerParams(
                # "parallel" lets the M axis shard across v7x's 2 TensorCores.
                # TODO(synk): switch to pltpu.CORE_PARALLEL if a v7x profile
                # shows one TensorCore idle.
                dimension_semantics=("parallel",),
                vmem_limit_bytes=32 * 1024 * 1024,
            ),
            cost_estimate=cost,
        )(patches, w_mat, b_mat)

    try:
        # Grid-invariant operands only need a single VMEM buffer.
        out = _call(dict(pipeline_mode=pl.Buffered(1)))
    except Exception:
        # Portability fallback (jax versions without BlockSpec.pipeline_mode /
        # single-buffer support); only costs one extra (K, E) VMEM buffer.
        out = _call({})

    return out.reshape(n, n_patches, e)


def _reference(x, weight, bias, patch_size):
    """Pure-JAX reference of the PyTorch forward (strided conv as patchify)."""
    y = jax.lax.conv_general_dilated(
        x, weight,
        window_strides=(patch_size, patch_size),
        padding="VALID",
        dimension_numbers=("NCHW", "OIHW", "NCHW"),
    ) + bias.reshape(1, -1, 1, 1)
    n, e, hp, wp = y.shape
    return y.reshape(n, e, hp * wp).transpose(0, 2, 1)


if __name__ == "__main__":
    # Small shapes consistent with the module.
    batch, in_chan, img_size, patch_size, embed_size = 2, 4, 16, 4, 32

    key = jax.random.PRNGKey(0)
    kx, kw, kb = jax.random.split(key, 3)

    x = jax.random.normal(kx, (batch, in_chan, img_size, img_size), jnp.float32)
    # Deterministic synthetic Conv2d params (shape: (E, C, p, p) like PyTorch).
    weight = jax.random.normal(
        kw, (embed_size, in_chan, patch_size, patch_size), jnp.float32) * 0.02
    bias = jax.random.normal(kb, (embed_size,), jnp.float32) * 0.02

    out = patch_embed(x, weight, bias, patch_size)
    out = jax.block_until_ready(out)

    # Reference: strided conv evaluated on the same bf16-rounded operands the
    # kernel consumes (both accumulate in f32); kernel output is bf16.
    ref = _reference(
        x.astype(jnp.bfloat16).astype(jnp.float32),
        weight.astype(jnp.bfloat16).astype(jnp.float32),
        bias, patch_size)

    n_patches = (img_size // patch_size) ** 2
    assert out.shape == (batch, n_patches, embed_size)
    assert out.dtype == jnp.bfloat16
    assert jnp.allclose(out.astype(jnp.float32), ref, atol=2e-2, rtol=2e-2)

    print("KERNEL_OK")
</pallas_src>

<mosaic_0001>
module attributes {stable_mosaic.version = 11 : i64} {
  func.func @_patch_embed_kernel(%arg0: i32, %arg1: memref<32x64xbf16, #tpu.memory_space<vmem>>, %arg2: memref<64x32xbf16, #tpu.memory_space<vmem>>, %arg3: memref<1x32xf32, #tpu.memory_space<vmem>>, %arg4: memref<32x32xbf16, #tpu.memory_space<vmem>>) attributes {dimension_semantics = [#tpu.dimension_semantics<parallel>], iteration_bounds = array<i64: 1>, scalar_prefetch = 0 : i64, scratch_operands = 0 : i64, tpu.core_type = #tpu.core_type<tc>, window_params = [{transform_indices = @transform_0, window_bounds = array<i64: 32, 64>}, {pipeline_mode = #tpu.pipeline_mode<synchronous>, transform_indices = @transform_1, window_bounds = array<i64: 64, 32>}, {pipeline_mode = #tpu.pipeline_mode<synchronous>, transform_indices = @transform_2, window_bounds = array<i64: 1, 32>}, {transform_indices = @transform_3, window_bounds = array<i64: 32, 32>}]} {
    %c0 = arith.constant 0 : index
    %c0_0 = arith.constant 0 : index
    %0 = vector.load %arg1[%c0, %c0_0] : memref<32x64xbf16, #tpu.memory_space<vmem>>, vector<32x64xbf16>
    %c0_1 = arith.constant 0 : index
    %c0_2 = arith.constant 0 : index
    %1 = vector.load %arg2[%c0_1, %c0_2] : memref<64x32xbf16, #tpu.memory_space<vmem>>, vector<64x32xbf16>
    %cst = arith.constant dense<0.000000e+00> : vector<32x32xf32>
    %2 = tpu.matmul %0, %1, %cst {dimension_numbers = #tpu.dot_dimension_numbers<[1], [0], [0], [1], [0, 0, 1, 1], [], []>} : vector<32x64xbf16>, vector<64x32xbf16>, vector<32x32xf32> -> vector<32x32xf32>
    %c0_3 = arith.constant 0 : index
    %c0_4 = arith.constant 0 : index
    %3 = vector.load %arg3[%c0_3, %c0_4] : memref<1x32xf32, #tpu.memory_space<vmem>>, vector<1x32xf32>
    %4 = vector.broadcast %3 : vector<1x32xf32> to vector<32x32xf32>
    %5 = arith.addf %2, %4 : vector<32x32xf32>
    %6 = arith.truncf %5 : vector<32x32xf32> to vector<32x32xbf16>
    %c0_5 = arith.constant 0 : index
    %c0_6 = arith.constant 0 : index
    %7 = vector.load %arg4[%c0_5, %c0_6] : memref<32x32xbf16, #tpu.memory_space<vmem>>, vector<32x32xbf16>
    tpu.vector_store %arg4[%c0_5, %c0_6], %6 {strides = array<i32>} : memref<32x32xbf16, #tpu.memory_space<vmem>>, vector<32x32xbf16>,
    return
  }
  func.func @transform_0(%arg0: i32) -> (i32, i32) {
    %c0_i32 = arith.constant 0 : i32
    %c0_i32_0 = arith.constant 0 : i32
    return %arg0, %c0_i32 : i32, i32
  }
  func.func @transform_1(%arg0: i32) -> (i32, i32) {
    %c0_i32 = arith.constant 0 : i32
    %c0_i32_0 = arith.constant 0 : i32
    %c0_i32_1 = arith.constant 0 : i32
    return %c0_i32, %c0_i32_0 : i32, i32
  }
  func.func @transform_2(%arg0: i32) -> (i32, i32) {
    %c0_i32 = arith.constant 0 : i32
    %c0_i32_0 = arith.constant 0 : i32
    %c0_i32_1 = arith.constant 0 : i32
    return %c0_i32, %c0_i32_0 : i32, i32
  }
  func.func @transform_3(%arg0: i32) -> (i32, i32) {
    %c0_i32 = arith.constant 0 : i32
    %c0_i32_0 = arith.constant 0 : i32
    return %arg0, %c0_i32 : i32, i32
  }
}

module attributes {stable_mosaic.version = 11 : i64} {
  func.func @_patch_embed_kernel(%arg0: i32, %arg1: memref<32x64xbf16, #tpu.memory_space<vmem>>, %arg2: memref<64x32xbf16, #tpu.memory_space<vmem>>, %arg3: memref<1x32xf32, #tpu.memory_space<vmem>>, %arg4: memref<32x32xbf16, #tpu.memory_space<vmem>>) attributes {dimension_semantics = [#tpu.dimension_semantics<parallel>], iteration_bounds = array<i64: 1>, scalar_prefetch = 0 : i64, scratch_operands = 0 : i64, tpu.core_type = #tpu.core_type<tc>, window_params = [{transform_indices = @transform_0, window_bounds = array<i64: 32, 64>}, {pipeline_mode = #tpu.pipeline_mode<synchronous>, transform_indices = @transform_1, window_bounds = array<i64: 64, 32>}, {pipeline_mode = #tpu.pipeline_mode<synchronous>, transform_indices = @transform_2, window_bounds = array<i64: 1, 32>}, {transform_indices = @transform_3, window_bounds = array<i64: 32, 32>}]} {
    %c0 = arith.constant 0 : index
    %c0_0 = arith.constant 0 : index
    %0 = vector.load %arg1[%c0, %c0_0] : memref<32x64xbf16, #tpu.memory_space<vmem>>, vector<32x64xbf16>
    %c0_1 = arith.constant 0 : index
    %c0_2 = arith.constant 0 : index
    %1 = vector.load %arg2[%c0_1, %c0_2] : memref<64x32xbf16, #tpu.memory_space<vmem>>, vector<64x32xbf16>
    %cst = arith.constant dense<0.000000e+00> : vector<32x32xf32>
    %2 = tpu.matmul %0, %1, %cst {dimension_numbers = #tpu.dot_dimension_numbers<[1], [0], [0], [1], [0, 0, 1, 1], [], []>} : vector<32x64xbf16>, vector<64x32xbf16>, vector<32x32xf32> -> vector<32x32xf32>
    %c0_3 = arith.constant 0 : index
    %c0_4 = arith.constant 0 : index
    %3 = vector.load %arg3[%c0_3, %c0_4] : memref<1x32xf32, #tpu.memory_space<vmem>>, vector<1x32xf32>
    %4 = vector.broadcast %3 : vector<1x32xf32> to vector<32x32xf32>
    %5 = arith.addf %2, %4 : vector<32x32xf32>
    %6 = arith.truncf %5 : vector<32x32xf32> to vector<32x32xbf16>
    %c0_5 = arith.constant 0 : index
    %c0_6 = arith.constant 0 : index
    %7 = vector.load %arg4[%c0_5, %c0_6] : memref<32x32xbf16, #tpu.memory_space<vmem>>, vector<32x32xbf16>
    tpu.vector_store %arg4[%c0_5, %c0_6], %6 {strides = array<i32>} : memref<32x32xbf16, #tpu.memory_space<vmem>>, vector<32x32xbf16>,
    return
  }
  func.func @transform_0(%arg0: i32) -> (i32, i32) {
    %c0_i32 = arith.constant 0 : i32
    %c0_i32_0 = arith.constant 0 : i32
    return %arg0, %c0_i32 : i32, i32
  }
  func.func @transform_1(%arg0: i32) -> (i32, i32) {
    %c0_i32 = arith.constant 0 : i32
    %c0_i32_0 = arith.constant 0 : i32
    %c0_i32_1 = arith.constant 0 : i32
    return %c0_i32, %c0_i32_0 : i32, i32
  }
  func.func @transform_2(%arg0: i32) -> (i32, i32) {
    %c0_i32 = arith.constant 0 : i32
    %c0_i32_0 = arith.constant 0 : i32
    %c0_i32_1 = arith.constant 0 : i32
    return %c0_i32, %c0_i32_0 : i32, i32
  }
  func.func @transform_3(%arg0: i32) -> (i32, i32) {
    %c0_i32 = arith.constant 0 : i32
    %c0_i32_0 = arith.constant 0 : i32
    return %arg0, %c0_i32 : i32, i32
  }
}

</mosaic_0001>

<bundles_post_ra>
// kernel: tpu_custom_call.1
= control target key start
LH: loop header
LB: loop body
LE: loop exit
PB: predicated region body
PF: predicated region fallthrough
CT: control target
= control target key end

     0   :  { %vm69_vm0 = vcmask 523264   ;;  %s290_s0 = inlined_call_operand.vmem [shape: bf16[32,64], index: 0, kind: input, shape index: {}]   ;;  %s291_s1 = inlined_call_operand.vmem [shape: bf16[64,32], index: 1, kind: input, shape index: {}]   ;;  %s292_s2 = inlined_call_operand.vmem [shape: f32[1,32], index: 2, kind: input, shape index: {}]   ;;  %s293_s3 = inlined_call_operand.hbm [shape: bf16[32,32], index: 3, kind: output, shape index: {}]  }
   0x1   :  { %v200_v0 = vld [vmem:[%s291_s1] sm:$0xff]   ;;  %v201_v1 = vld [vmem:[%s291_s1 + $0x8] sm:$0xff]   ;;  %v202_v2 = vld [vmem:[%s291_s1 + $0x10] sm:$0xff]  }
   0x2   :  { %185 = vmatprep.subr.bf16.mxu0 %v200_v0  ;;  %v204_v3 = vld [vmem:[%s290_s0] sm:$0xff]  }
   0x3   :  { %186 = vmatpush3.bf16.msra.mxu0 %v200_v0  ;;  %193 = vmatprep.mubr.msk.bf16.mxu0 %vm69_vm0, %v204_v3 }
   0x4   :  { %187 = vmatprep.subr.bf16.mxu0 %v201_v1 }
   0x5   :  { %8 = vsyncpa [#allocation3], 0  ;;  %v203_v4 = vld [vmem:[%s291_s1 + $0x18] sm:$0xff]   ;;  %v205_v5 = vld [vmem:[%s290_s0 + $0x8] sm:$0xff]   ;;  %vm141_vm1 = vcmask 257024   ;;  %s230_s26 = smov [#allocation2]  }
   0x6   :  { %v162_v6 = vld [vmem:[%s292_s2] ss:$0 sm:$0xff]  ;;  %s151_s1 = sshll.u32 %s230_s26, 4  ;;  %s152_s1 = int_to_ptr.vmem [resolvable:$true] %s151_s1 }
   0x7   :  { %188 = vmatpush3.bf16.msra.mxu0 %v201_v1  ;;  %s206_s0 = scalar_lea.vmem %s152_s1, 256  ;;  %p211_p1 = scmp.lt.s32.totalorder %s152_s1, %s152_s1 }
   0x8   :  { %189 = vmatprep.subr.bf16.mxu0 %v202_v2  ;;  %p207_p0 = scmp.ne.s32.totalorder %s152_s1, %s206_s0  ;;  %p212_p2 = scmp.lt.s32.totalorder %s206_s0, %s206_s0 }
   0xa   :  { %p213_p3 = por %p212_p2, %p211_p1 }
   0xb   :  { %190 = vmatpush3.bf16.msra.mxu0 %v202_v2 }
   0xc   :  { %191 = vmatprep.subr.bf16.mxu0 %v203_v4  ;;  %p214_p4 = pnand %p213_p3, %p207_p0 }
   0xf   :  { %192 = vmatpush3.bf16.msra.mxu0 %v203_v4 }
  0x12   :  { %194 = vmatmul.mubr.msk.bf16.vlgmr.msra.gmra.mrb[0].mxu0 %vm69_vm0, %v205_v5 }
  0xe5   :  { %v195_v7 = vpop.f32.mrb[0].mxu0 }
  0xe6   :  { %v119_v8 = vadd.f32 %v195_v7, %v162_v6  ;;  %v110_v9 = vpop.f32.mrb[1].mxu0 }
  0xe7   :  { %v111_v10 = vadd.f32 %v162_v6, %v110_v9  ;;  %v196_v11 = vpop.f32.mrb[2].mxu0 }
  0xe8   :  { %v177_v12 = vpack.c.bf16 %v119_v8, %v119_v8  ;;  %v122_v13 = vadd.f32 %v196_v11, %v162_v6  ;;  %v113_v14 = vpop.f32.mrb[3].mxu0 }
  0xe9   :  { %v175_v15 = vpack.c.bf16 %v111_v10, %v111_v10  ;;  %v114_v16 = vadd.f32 %v162_v6, %v113_v14 }
  0xea   :  { %144 = vst.msk [vmem:[#allocation2 + $0x8] sm:$0xf] %vm141_vm1, %v177_v12  ;;  %v178_v17 = vpack.c.bf16 %v122_v13, %v122_v13 }
  0xeb   :  { %142 = vst.msk [vmem:[#allocation2] sm:$0xf] %vm141_vm1, %v175_v15  ;;  %v176_v18 = vpack.c.bf16 %v114_v16, %v114_v16 }
  0xec   :  { %145 = vst.msk [vmem:[#allocation2 + $0xc] sm:$0xf] %vm141_vm1, %v178_v17 }
  0xed   :  { %143 = vst.msk [vmem:[#allocation2 + $0x4] sm:$0xf] %vm141_vm1, %v176_v18 }
  0xee   :  { %217 = shalt.err (!%p214_p4)
}
  0xef   :  { %s218_s28 = scalar_lea.hbm %s293_s3, 256 }
  0xf0   :  { %p219_p5 = scmp.ne.s32.totalorder %s293_s3, %s218_s28  ;;  %p222_p6 = scmp.lt.u32.totalorder %s218_s28, %s293_s3 }
  0xf2   :  { %p224_p7 = pnand %p222_p6, %p219_p5 }
  0xf4   :  { %227 = shalt.err (!%p224_p7)
}
  0xf5   :  { %s231_s6 = smov 64   ;;  %s232_s7 = smov 4  }
  0xf6   :  { %157 = dma.vmem_to_hbm [thread:$0]  %s152_s1, 256, %s293_s3, [#allocation3], %s231_s6, %s231_s6, %s232_s7  }
  0xf7   :  { %228 = dma.done.wait [#allocation3], 256  }
  0xf8   :  { %229 = vsyncadd [#allocation3], 4294967040 }
  0xf9   :  { %161 = vsyncpa [#allocation3], 1 }

// kernel: tpu_custom_call.1
= control target key start
LH: loop header
LB: loop body
LE: loop exit
PB: predicated region body
PF: predicated region fallthrough
CT: control target
= control target key end

     0   :  { %vm69_vm0 = vcmask 523264   ;;  %s290_s0 = inlined_call_operand.vmem [shape: bf16[32,64], index: 0, kind: input, shape index: {}]   ;;  %s291_s1 = inlined_call_operand.vmem [shape: bf16[64,32], index: 1, kind: input, shape index: {}]   ;;  %s292_s2 = inlined_call_operand.vmem [shape: f32[1,32], index: 2, kind: input, shape index: {}]   ;;  %s293_s3 = inlined_call_operand.hbm [shape: bf16[32,32], index: 3, kind: output, shape index: {}]  }
   0x1   :  { %v200_v0 = vld [vmem:[%s291_s1] sm:$0xff]   ;;  %v201_v1 = vld [vmem:[%s291_s1 + $0x8] sm:$0xff]   ;;  %v202_v2 = vld [vmem:[%s291_s1 + $0x10] sm:$0xff]  }
   0x2   :  { %185 = vmatprep.subr.bf16.mxu0 %v200_v0  ;;  %v204_v3 = vld [vmem:[%s290_s0] sm:$0xff]  }
   0x3   :  { %186 = vmatpush3.bf16.msra.mxu0 %v200_v0  ;;  %193 = vmatprep.mubr.msk.bf16.mxu0 %vm69_vm0, %v204_v3 }
   0x4   :  { %187 = vmatprep.subr.bf16.mxu0 %v201_v1 }
   0x5   :  { %8 = vsyncpa [#allocation3], 0  ;;  %v203_v4 = vld [vmem:[%s291_s1 + $0x18] sm:$0xff]   ;;  %v205_v5 = vld [vmem:[%s290_s0 + $0x8] sm:$0xff]   ;;  %vm141_vm1 = vcmask 257024   ;;  %s230_s26 = smov [#allocation2]  }
   0x6   :  { %v162_v6 = vld [vmem:[%s292_s2] ss:$0 sm:$0xff]  ;;  %s151_s1 = sshll.u32 %s230_s26, 4  ;;  %s152_s1 = int_to_ptr.vmem [resolvable:$true] %s151_s1 }
   0x7   :  { %188 = vmatpush3.bf16.msra.mxu0 %v201_v1  ;;  %s206_s0 = scalar_lea.vmem %s152_s1, 256  ;;  %p211_p1 = scmp.lt.s32.totalorder %s152_s1, %s152_s1 }
   0x8   :  { %189 = vmatprep.subr.bf16.mxu0 %v202_v2  ;;  %p207_p0 = scmp.ne.s32.totalorder %s152_s1, %s206_s0  ;;  %p212_p2 = scmp.lt.s32.totalorder %s206_s0, %s206_s0 }
   0xa   :  { %p213_p3 = por %p212_p2, %p211_p1 }
   0xb   :  { %190 = vmatpush3.bf16.msra.mxu0 %v202_v2 }
   0xc   :  { %191 = vmatprep.subr.bf16.mxu0 %v203_v4  ;;  %p214_p4 = pnand %p213_p3, %p207_p0 }
   0xf   :  { %192 = vmatpush3.bf16.msra.mxu0 %v203_v4 }
  0x12   :  { %194 = vmatmul.mubr.msk.bf16.vlgmr.msra.gmra.mrb[0].mxu0 %vm69_vm0, %v205_v5 }
  0xe5   :  { %v195_v7 = vpop.f32.mrb[0].mxu0 }
  0xe6   :  { %v119_v8 = vadd.f32 %v195_v7, %v162_v6  ;;  %v110_v9 = vpop.f32.mrb[1].mxu0 }
  0xe7   :  { %v111_v10 = vadd.f32 %v162_v6, %v110_v9  ;;  %v196_v11 = vpop.f32.mrb[2].mxu0 }
  0xe8   :  { %v177_v12 = vpack.c.bf16 %v119_v8, %v119_v8  ;;  %v122_v13 = vadd.f32 %v196_v11, %v162_v6  ;;  %v113_v14 = vpop.f32.mrb[3].mxu0 }
  0xe9   :  { %v175_v15 = vpack.c.bf16 %v111_v10, %v111_v10  ;;  %v114_v16 = vadd.f32 %v162_v6, %v113_v14 }
  0xea   :  { %144 = vst.msk [vmem:[#allocation2 + $0x8] sm:$0xf] %vm141_vm1, %v177_v12  ;;  %v178_v17 = vpack.c.bf16 %v122_v13, %v122_v13 }
  0xeb   :  { %142 = vst.msk [vmem:[#allocation2] sm:$0xf] %vm141_vm1, %v175_v15  ;;  %v176_v18 = vpack.c.bf16 %v114_v16, %v114_v16 }
  0xec   :  { %145 = vst.msk [vmem:[#allocation2 + $0xc] sm:$0xf] %vm141_vm1, %v178_v17 }
  0xed   :  { %143 = vst.msk [vmem:[#allocation2 + $0x4] sm:$0xf] %vm141_vm1, %v176_v18 }
  0xee   :  { %217 = shalt.err (!%p214_p4)
}
  0xef   :  { %s218_s28 = scalar_lea.hbm %s293_s3, 256 }
  0xf0   :  { %p219_p5 = scmp.ne.s32.totalorder %s293_s3, %s218_s28  ;;  %p222_p6 = scmp.lt.u32.totalorder %s218_s28, %s293_s3 }
  0xf2   :  { %p224_p7 = pnand %p222_p6, %p219_p5 }
  0xf4   :  { %227 = shalt.err (!%p224_p7)
}
  0xf5   :  { %s231_s6 = smov 64   ;;  %s232_s7 = smov 4  }
  0xf6   :  { %157 = dma.vmem_to_hbm [thread:$0]  %s152_s1, 256, %s293_s3, [#allocation3], %s231_s6, %s231_s6, %s232_s7  }
  0xf7   :  { %228 = dma.done.wait [#allocation3], 256  }
  0xf8   :  { %229 = vsyncadd [#allocation3], 4294967040 }
  0xf9   :  { %161 = vsyncpa [#allocation3], 1 }

</bundles_post_ra>
